<compile_context>
chip_gen: v7x
topology: tpu7x:2x2x1
jax: 0.10.0
libtpu: 0.0.40
codegen_flags: <defaults>
</compile_context>

<pallas_src>
import jax
import jax.numpy as jnp
from jax import lax
from jax.experimental import pallas as pl
from jax.experimental.pallas import tpu as pltpu


def _linear_kernel(x_ref, w_ref, b_ref, o_ref):
    """One (tm, tn) output block, computed in a single shot (full-K tiles).

    x_ref: (tm, IN)   activation slab
    w_ref: (tn, IN)   weight slab in PyTorch (OUT, IN) layout (contiguous rows)
    b_ref: (1, tn)    bias row (f32)
    o_ref: (tm, tn)   f32 output block
    """
    acc = lax.dot_general(
        x_ref[...],
        w_ref[...],
        dimension_numbers=(((1,), (1,)), ((), ())),  # x @ W.T, no transpose materialized host-side
        preferred_element_type=jnp.float32,
    )
    o_ref[...] = (acc + b_ref[...]).astype(o_ref.dtype)


def linear_classifier(x, weight, bias, *, param_dtype=None):
    """y = x @ weight.T + bias  (PyTorch nn.Linear semantics).

    x:      (B, IN)   float32
    weight: (OUT, IN) float32   (PyTorch layout, NOT transposed)
    bias:   (OUT,)    float32
    param_dtype: optional streaming dtype (e.g. jnp.bfloat16) for x/weight;
                 accumulation stays f32.  None == exact f32 semantics.
    returns (B, OUT)  float32
    """
    B, IN = x.shape
    OUT, IN_w = weight.shape
    assert IN == IN_w, "in_features mismatch"

    # Pad the *output* lane extent to a multiple of 128 (1000 -> 1024 for the
    # real head); weight/bias stay unpadded, extra output columns are sliced.
    OUT_pad = -(-OUT // 128) * 128

    # N blocking: 2 blocks when possible so a "parallel" axis exists; else one.
    if OUT_pad % 256 == 0:
        tn, nj = OUT_pad // 2, 2
    else:
        tn, nj = OUT_pad, 1

    # Batch blocking: cap the batch block so VMEM stays bounded for large B.
    tm = B if B <= 256 else 256
    nb = pl.cdiv(B, tm)

    # Optional reduced-precision streaming (the single biggest HBM lever).
    if param_dtype is not None:
        x_in = x.astype(param_dtype)
        w_in = weight.astype(param_dtype)
    else:
        x_in = x
        w_in = weight
    b2d = bias.reshape(1, OUT).astype(jnp.float32)  # lane-dense f32 bias row

    cost = pl.CostEstimate(
        flops=2 * B * IN * OUT,
        transcendentals=0,
        bytes_accessed=(w_in.size * w_in.dtype.itemsize
                        + x_in.size * x_in.dtype.itemsize
                        + B * OUT_pad * 4),
    )

    out_padded = pl.pallas_call(
        _linear_kernel,
        out_shape=jax.ShapeDtypeStruct((B, OUT_pad), jnp.float32),
        grid_spec=pltpu.PrefetchScalarGridSpec(
            num_scalar_prefetch=0,
            grid=(nb, nj),
            in_specs=[
                pl.BlockSpec((tm, IN), lambda b, j: (b, 0)),   # x slab (full K)
                pl.BlockSpec((tn, IN), lambda b, j: (j, 0)),   # weight slab (OUT, IN), contiguous rows
                pl.BlockSpec((1, tn), lambda b, j: (0, j)),    # bias row
            ],
            out_specs=pl.BlockSpec((tm, tn), lambda b, j: (b, j)),
        ),
        compiler_params=pltpu.CompilerParams(
            dimension_semantics=("parallel", "parallel"),
            vmem_limit_bytes=32 * 1024 * 1024,
        ),
        cost_estimate=cost,
    )(x_in, w_in, b2d)

    return out_padded if OUT_pad == OUT else out_padded[:, :OUT]


if __name__ == "__main__":
    # Small shapes consistent with the module (real head is 2048 -> 1000).
    key = jax.random.PRNGKey(0)
    kx, kw, kb, kx2, kw2, kb2 = jax.random.split(key, 6)

    # --- check 1: clean multiple-of-128 shapes, exact f32 path --------------
    B, IN_FEATURES, NUM_CLASSES = 16, 512, 256
    x = jax.random.normal(kx, (B, IN_FEATURES), dtype=jnp.float32)
    weight = jax.random.normal(kw, (NUM_CLASSES, IN_FEATURES), dtype=jnp.float32) * 0.02
    bias = jax.random.normal(kb, (NUM_CLASSES,), dtype=jnp.float32) * 0.02

    y = jax.block_until_ready(linear_classifier(x, weight, bias))
    y_ref = x @ weight.T + bias
    assert y.shape == (B, NUM_CLASSES)
    assert jnp.allclose(y, y_ref, atol=1e-4, rtol=1e-4), "mismatch vs reference (div.)"

    # --- check 2: OUT not a multiple of 128 (same padding path the real
    # 1000-class head uses) ---------------------------------------------------
    B2, IN2, OUT2 = 4, 256, 250
    x2 = jax.random.normal(kx2, (B2, IN2), dtype=jnp.float32)
    w2 = jax.random.normal(kw2, (OUT2, IN2), dtype=jnp.float32) * 0.02
    b2 = jax.random.normal(kb2, (OUT2,), dtype=jnp.float32) * 0.02

    y2 = jax.block_until_ready(linear_classifier(x2, w2, b2))
    y2_ref = x2 @ w2.T + b2
    assert y2.shape == (B2, OUT2)
    assert jnp.allclose(y2, y2_ref, atol=1e-4, rtol=1e-4), "mismatch vs reference (padded)"

    # --- check 3: bf16 weight-streaming path (optional ~2x HBM traffic win;
    # looser tolerance since this intentionally relaxes nn.Linear f32 math) ---
    y3 = jax.block_until_ready(
        linear_classifier(x, weight, bias, param_dtype=jnp.bfloat16))
    assert y3.shape == (B, NUM_CLASSES)
    assert jnp.allclose(y3, y_ref, atol=5e-2, rtol=5e-2), "mismatch vs reference (bf16)"

    print("KERNEL_OK")
</pallas_src>

<mosaic_0001>
module attributes {stable_mosaic.version = 11 : i64} {
  func.func @_linear_kernel(%arg0: i32, %arg1: i32, %arg2: memref<16x512xf32, #tpu.memory_space<vmem>>, %arg3: memref<128x512xf32, #tpu.memory_space<vmem>>, %arg4: memref<1x128xf32, #tpu.memory_space<vmem>>, %arg5: memref<16x128xf32, #tpu.memory_space<vmem>>) attributes {dimension_semantics = [#tpu.dimension_semantics<parallel>, #tpu.dimension_semantics<parallel>], iteration_bounds = array<i64: 1, 2>, scalar_prefetch = 0 : i64, scratch_operands = 0 : i64, tpu.core_type = #tpu.core_type<tc>, window_params = [{transform_indices = @transform_0, window_bounds = array<i64: 16, 512>}, {transform_indices = @transform_1, window_bounds = array<i64: 128, 512>}, {transform_indices = @transform_2, window_bounds = array<i64: 1, 128>}, {transform_indices = @transform_3, window_bounds = array<i64: 16, 128>}]} {
    %c0 = arith.constant 0 : index
    %c0_0 = arith.constant 0 : index
    %0 = vector.load %arg2[%c0, %c0_0] : memref<16x512xf32, #tpu.memory_space<vmem>>, vector<16x512xf32>
    %c0_1 = arith.constant 0 : index
    %c0_2 = arith.constant 0 : index
    %1 = vector.load %arg3[%c0_1, %c0_2] : memref<128x512xf32, #tpu.memory_space<vmem>>, vector<128x512xf32>
    %cst = arith.constant dense<0.000000e+00> : vector<16x128xf32>
    %2 = tpu.matmul %0, %1, %cst {dimension_numbers = #tpu.dot_dimension_numbers<[1], [1], [0], [0], [0, 0, 1, 0], [], []>} : vector<16x512xf32>, vector<128x512xf32>, vector<16x128xf32> -> vector<16x128xf32>
    %c0_3 = arith.constant 0 : index
    %c0_4 = arith.constant 0 : index
    %3 = vector.load %arg4[%c0_3, %c0_4] : memref<1x128xf32, #tpu.memory_space<vmem>>, vector<1x128xf32>
    %4 = vector.broadcast %3 : vector<1x128xf32> to vector<16x128xf32>
    %5 = arith.addf %2, %4 : vector<16x128xf32>
    %c0_5 = arith.constant 0 : index
    %c0_6 = arith.constant 0 : index
    %6 = vector.load %arg5[%c0_5, %c0_6] : memref<16x128xf32, #tpu.memory_space<vmem>>, vector<16x128xf32>
    tpu.vector_store %arg5[%c0_5, %c0_6], %5 {strides = array<i32>} : memref<16x128xf32, #tpu.memory_space<vmem>>, vector<16x128xf32>,
    return
  }
  func.func @transform_0(%arg0: i32, %arg1: i32) -> (i32, i32) {
    %c0_i32 = arith.constant 0 : i32
    %c0_i32_0 = arith.constant 0 : i32
    return %arg0, %c0_i32 : i32, i32
  }
  func.func @transform_1(%arg0: i32, %arg1: i32) -> (i32, i32) {
    %c0_i32 = arith.constant 0 : i32
    %c0_i32_0 = arith.constant 0 : i32
    return %arg1, %c0_i32 : i32, i32
  }
  func.func @transform_2(%arg0: i32, %arg1: i32) -> (i32, i32) {
    %c0_i32 = arith.constant 0 : i32
    %c0_i32_0 = arith.constant 0 : i32
    return %c0_i32, %arg1 : i32, i32
  }
  func.func @transform_3(%arg0: i32, %arg1: i32) -> (i32, i32) {
    %c0_i32 = arith.constant 0 : i32
    return %arg0, %arg1 : i32, i32
  }
}

</mosaic_0001>

<bundles_post_ra>
// kernel: tpu_custom_call.1
= control target key start
LH: loop header
LB: loop body
LE: loop exit
PB: predicated region body
PF: predicated region fallthrough
CT: control target
= control target key end

     0   :  { %8 = vsyncpa [#allocation3], 0  ;;  %s1235_s0 = inlined_call_operand.hbm [shape: f32[16,512], index: 0, kind: input, shape index: {}]   ;;  %s1236_s1 = inlined_call_operand.hbm [shape: f32[256,512], index: 1, kind: input, shape index: {}]   ;;  %s1237_s2 = inlined_call_operand.vmem [shape: f32[1,256], index: 2, kind: input, shape index: {}]   ;;  %s1238_s3 = inlined_call_operand.hbm [shape: f32[16,256], index: 3, kind: output, shape index: {}]  }
   0x1   :  { %9 = vsyncpa [#allocation6], 0 }
   0x2   :  { %11 = vsyncpa [#allocation6 + $0x1], 0 }
   0x3   :  { %12 = vsyncpa [#allocation4], 0 }
   0x4   :  { %14 = vsyncpa [#allocation4 + $0x1], 0  ;;  %s938_s12 = smov 0   ;;  %s940_s13 = smov 0  }
   0x5   :  { %s942_s14 = smov 0   ;;  %s944_s15 = smov 0  }
   0x6   :  { %s946_s16 = smov 0   ;;  %s948_s17 = smov 0  }
   0x7 LB: > { %s598_s18 = sadd.s32 4294967295, %s908_s17   ;;  %s599_s19 = sadd.s32 4294967294, %s908_s17   ;;  %s908_s17 = sphi %s948_s17, %s20_s17   ;;  %s904_s16 = sphi %s946_s16, %s1262_s16   ;;  %s900_s15 = sphi %s944_s15, %s1261_s15   ;;  %s896_s14 = sphi %s942_s14, %s1260_s14   ;;  %s892_s13 = sphi %s940_s13, %s1259_s13   ;;  %s888_s12 = sphi %s938_s12, %s1258_s12  }
   0x8   : > { %p78_p0 = scmp.ne.s32.totalorder %s892_s13, %s888_s12  ;;  %p972_p1 = scmp.eq.s32.totalorder %s598_s18, 0 }
   0x9   : > { %p976_p2 = scmp.eq.s32.totalorder %s598_s18, 1  ;;  %p136_p3 = scmp.eq.s32.totalorder %s599_s19, 1 }
   0xa   : > { %s1243_s20 = scalar_select %p972_p1, 1, 0 }
   0xb   : > { %s1244_s21 = scalar_select %p976_p2, 1, 0 }
   0xc   : > { %p982_p4 = por %p972_p1, %p78_p0  ;;  %p600_p5 = scmp.ge.s32.totalorder %s908_s17, 1 }
   0xd   : > { %p987_p6 = por %p136_p3, %p78_p0  ;;  %p143_p7 = scmp.lt.s32.totalorder %s908_s17, 3 }
   0xe   : > { %s1245_s22 = scalar_select %p982_p4, 1, 0 }
   0xf   : > { %s1246_s23 = scalar_select %p987_p6, 1, 0 }
  0x10   : > { %p992_p8 = pnand %p600_p5, %p143_p7  ;;  %s910_s25 = smov [#allocation2]  }
  0x11   : > { %s159_s26 = sshll.u32 %s910_s25, 4  ;;  %s29_s28 = sadd.s32 1, %s904_s16  ;;  %s160_s26 = int_to_ptr.vmem [resolvable:$true] %s159_s26 }
  0x12   : > { %s1247_s24 = scalar_select %p992_p8, 1, 0 }
  0x13   : > { %p694_p9 = pneg %p992_p8  ;;  %s764_s4 = scalar_lea.hbm %s1235_s0, 1024 }
  0x14   : > { %p765_p12 = scmp.ne.s32.totalorder %s1235_s0, %s764_s4  ;;  %p771_p5 = scmp.lt.u32.totalorder %s764_s4, %s1235_s0 }
  0x15   : > { %p1001_p11 = pnand %p694_p9, %p972_p1 }
  0x17   : > { %p766_p13 = pneg %p1001_p11 }
  0x19   : > { %p767_p0 = pnand %p766_p13, %p765_p12 }
  0x1b   : > { %p768_p3 = pneg %p767_p0 }
  0x1d   : > { %p773_p7 = pnand %p771_p5, %p768_p3 }
  0x1f   : > { %776 = shalt.err (!%p773_p7)
}
  0x20   : > { %s777_s9 = scalar_lea.vmem %s160_s26, 1024  ;;  %p785_p4 = scmp.lt.s32.totalorder %s160_s26, %s160_s26 }
  0x21   : > { %p778_p9 = scmp.ne.s32.totalorder %s160_s26, %s777_s9  ;;  %p786_p1 = scmp.lt.s32.totalorder %s777_s9, %s777_s9 }
  0x23   : > { %p780_p10 = pnand %p778_p9, %p766_p13  ;;  %p787_p8 = por %p786_p1, %p785_p4 }
  0x25   : > { %p781_p6 = pneg %p780_p10 }
  0x27   : > { %p788_p2 = pnand %p787_p8, %p781_p6 }
  0x29   : > { %791 = shalt.err (!%p788_p2)
}
  0x2a   : > { %s911_s10 = smov 512   ;;  %s912_s11 = smov 32  }
  0x2b   : > { %697 = dma.hbm_to_vmem [thread:$0]  (!%p1001_p11), %s1235_s0, 1024, %s160_s26, [#allocation3], %s911_s10, %s911_s10, %s912_s11  }
  0x2c   : > { %p30_p1 = scmp.ge.s32.totalorder %s29_s28, 2  ;;  %s65_s25 = sadd.s32 1, %s896_s14 }
  0x2d   : > { %p72_p2 = scmp.ne.s32.totalorder %s896_s14, %s892_s13  ;;  %p73_p4 = scmp.eq.s32.totalorder %s908_s17, 0 }
  0x2e   : > { %s1264_s28 = smov (%p30_p1, %s29_s28), 0  ;;  %p1250_p8 = scmp.ne.s32.totalorder %s1244_s21, 0 }
  0x2f   : > { %p1031_p6 = por %p73_p4, %p72_p2  ;;  %s62_s30 = ssub.s32 %s904_s16, %s1264_s28 }
  0x30   : > { %p1037_p10 = por %p1250_p8, %p72_p2  ;;  %p707_p12 = scmp.lt.s32.totalorder %s908_s17, 2 }
  0x31   : > { %p63_p11 = scmp.eq.s32.totalorder %s62_s30, 0  ;;  %s173_s26 = sand.u32 1, %s896_s14  }
  0x32   : > { %s603_s4 = sshll.u32 %s173_s26, 9  ;;  %s617_s6 = sshll.u32 %s904_s16, 13 }
  0x33   : > { %s1046_s5 = scalar_select %p63_p11, %s896_s14, %s65_s25  }
  0x34   : > { %s1052_s9 = scalar_lea.hbm %s1236_s1, %s617_s6  ;;  %s177_s21 = scalar_lea.vmem [#allocation5], %s603_s4 }
  0x35   : > { %s185_s18 = sshll.u32 %s177_s21, 4  ;;  %p1058_p13 = pnand %p707_p12, %p1031_p6  ;;  %s1054_s18 = int_to_ptr.vmem [resolvable:$true] %s185_s18 }
  0x36   : > { %s1062_s25 = scalar_lea.sflag [#allocation6], %s173_s26  ;;  %s792_s30 = scalar_lea.hbm %s1052_s9, 8192 }
  0x37   : > { %p793_p0 = scmp.ne.s32.totalorder %s1052_s9, %s792_s30  ;;  %p794_p3 = pneg %p1058_p13 }
  0x38   : > { %s797_s29 = scalar_lea.hbm %s1236_s1, 16384  ;;  %p798_p9 = scmp.lt.u32.totalorder %s1052_s9, %s1236_s1 }
  0x39   : > { %p795_p5 = pnand %p794_p3, %p793_p0  ;;  %p799_p1 = scmp.lt.u32.totalorder %s797_s29, %s792_s30 }
  0x3a   : > { %p801_p4 = scmp.lt.u32.totalorder %s792_s30, %s1052_s9 }
  0x3b   : > { %p796_p7 = pneg %p795_p5  ;;  %p800_p2 = por %p799_p1, %p798_p9 }
  0x3d   : > { %p802_p6 = por %p801_p4, %p800_p2 }
  0x3f   : > { %p803_p8 = pnand %p802_p6, %p796_p7 }
  0x41   : > { %806 = shalt.err (!%p803_p8)
}
  0x42   : > { %s807_s26 = scalar_lea.vmem %s1054_s18, 8192  ;;  %s913_s21 = smov [#allocation5]  }
  0x43   : > { %p808_p12 = scmp.ne.s32.totalorder %s1054_s18, %s807_s26  ;;  %s812_s4 = sshll.u32 %s913_s21, 4  ;;  %s813_s4 = int_to_ptr.vmem [resolvable:$false] %s812_s4 }
  0x44   : > { %s814_s6 = scalar_lea.vmem %s813_s4, 16384  ;;  %p815_p5 = scmp.lt.s32.totalorder %s1054_s18, %s813_s4 }
  0x45   : > { %p810_p11 = pnand %p808_p12, %p794_p3  ;;  %p816_p9 = scmp.lt.s32.totalorder %s814_s6, %s807_s26 }
  0x47   : > { %p811_p0 = pneg %p810_p11  ;;  %p817_p1 = por %p816_p9, %p815_p5 }
  0x49   : > { %p818_p2 = pnand %p817_p1, %p811_p0 }
  0x4b   : > { %821 = shalt.err (!%p818_p2)
}
  0x4c   : > { %701 = dma.hbm_to_vmem [thread:$0]  (!%p1058_p13), %s1052_s9, 8192, %s1054_s18, %s1062_s25, %s911_s10, %s911_s10, %s912_s11  }
  0x4d   : > { %p1253_p3 = scmp.ne.s32.totalorder %s1247_s24, 0 }
  0x4e   : > { %p1254_p7 = scmp.ne.s32.totalorder (!%p1253_p3), %s1243_s20, 0 }
  0x4f   : > { %203 = sbr.rel (%p1253_p3) target bundleno = 395 (0x18b), region = 32 }
  0x56   : > { %875 = dma.done.wait (%p1254_p7), [#allocation3], 1024  }
  0x57   : > { %877 = vsyncadd (%p1254_p7), [#allocation3], 4294966272  ;;  %s1100_s30 = sand.u32 1, %s892_s13   ;;  %p1255_p13 = scmp.ne.s32.totalorder %s1245_s22, 0 }
  0x58   : > { %s609_s19 = sshll.u32 %s1100_s30, 9  ;;  %s210_s29 = scalar_lea.sflag [#allocation6], %s1100_s30 }
  0x59   : > { %s1104_s7 = scalar_lea.vmem [#allocation5], %s609_s19 }
  0x5a   : > { %879 = dma.done.wait (%p1255_p13), %s210_s29, 8192  }
  0x5b   : > { %881 = vsyncadd (%p1255_p13), %s210_s29, 4294959104  ;;  %v254_v0 = vld [vmem:[%s1104_s7 + $0x8] sm:$0xff]  ;;  %v253_v2 = vld [vmem:[%s1104_s7] sm:$0xff]  ;;  %p241_p4 = scmp.lt.s32.totalorder %s900_s15, 1  ;;  %s610_s11 = sshll.u32 %s1100_s30, 4 }
  0x5c   : > { %v258_v1 = vld [vmem:[%s1104_s7 + $0x28] sm:$0xff]  ;;  %v257_v4 = vld [vmem:[%s1104_s7 + $0x20] sm:$0xff]  ;;  %v256_v5 = vld [vmem:[%s1104_s7 + $0x18] sm:$0xff]  ;;  %s238_s9 = scalar_lea.vmem [#allocation7], %s610_s11  ;;  %s613_s25 = sshll.u32 %s900_s15, 7 }
  0x5d   : > { %v618_v3 = vpack.c.bf16 %v258_v1, %v254_v0  ;;  %v260_v6 = vld [vmem:[%s1104_s7 + $0x38] sm:$0xff]  ;;  %v620_v7 = vpack.c.bf16 %v257_v4, %v253_v2  ;;  %v255_v9 = vld [vmem:[%s1104_s7 + $0x10] sm:$0xff]  ;;  %v262_v11 = vld [vmem:[%s1104_s7 + $0x48] sm:$0xff]  ;;  %s242_s20 = scalar_select %p241_p4, %s900_s15, 1 }
  0x5e   : > { %v650_v8 = vpack.c.bf16 %v260_v6, %v256_v5  ;;  %v259_v10 = vld [vmem:[%s1104_s7 + $0x30] sm:$0xff]  ;;  %v266_v13 = vld [vmem:[%s1104_s7 + $0x68] sm:$0xff]  ;;  %v264_v15 = vld [vmem:[%s1104_s7 + $0x58] sm:$0xff]  ;;  %s492_s18 = sshll.u32 %s238_s9, 4  ;;  %s1186_s21 = scalar_lea.hbm %s1238_s3, %s613_s25  ;;  %s1181_s18 = int_to_ptr.vmem [resolvable:$true] %s492_s18 }
  0x5f   : > { %619 = vmatprep.subr.bf16.mxu1 %v618_v3  ;;  %v652_v12 = vpack.c.bf16 %v259_v10, %v255_v9  ;;  %v622_v14 = vpack.c.bf16 %v266_v13, %v262_v11  ;;  %v268_v16 = vld [vmem:[%s1104_s7 + $0x78] sm:$0xff]  ;;  %v261_v17 = vld [vmem:[%s1104_s7 + $0x40] sm:$0xff]  ;;  %v263_v20 = vld [vmem:[%s1104_s7 + $0x50] sm:$0xff]  ;;  %s243_s10 = scalar_lea.vmem %s1237_s2, %s242_s20  ;;  %s477_s4 = scalar_lea.sflag [#allocation4], %s1100_s30 }
  0x60   : > { %621 = vmatpush1.bf16.xpose.msra.mxu1 %v620_v7  ;;  %651 = vmatprep.subr.bf16.mxu0 %v650_v8  ;;  %v265_v18 = vld [vmem:[%s1104_s7 + $0x60] sm:$0xff]  ;;  %v654_v19 = vpack.c.bf16 %v268_v16, %v264_v15  ;;  %v267_v21 = vld [vmem:[%s1104_s7 + $0x70] sm:$0xff]  ;;  %v270_v22 = vld [vmem:[%s1104_s7 + $0x88] sm:$0xff]  ;;  %s822_s15 = scalar_lea.vmem %s1181_s18, 256  ;;  %s914_s6 = smov [#allocation7]  }
  0x61   : > { %653 = vmatpush1.bf16.xpose.msra.mxu0 %v652_v12  ;;  %623 = vmatprep.subr.bf16.mxu1 %v622_v14  ;;  %v274_v23 = vld [vmem:[%s1104_s7 + $0xa8] sm:$0xff]  ;;  %v272_v24 = vld [vmem:[%s1104_s7 + $0x98] sm:$0xff]  ;;  %v624_v26 = vpack.c.bf16 %v265_v18, %v261_v17  ;;  %v656_v27 = vpack.c.bf16 %v267_v21, %v263_v20  ;;  %v269_v30 = vld [vmem:[%s1104_s7 + $0x80] sm:$0xff]  ;;  %p823_p6 = scmp.ne.s32.totalorder %s1181_s18, %s822_s15  ;;  %s826_s19 = sshll.u32 %s914_s6, 4  ;;  %s827_s19 = int_to_ptr.vmem [resolvable:$false] %s826_s19 }
  0x62   : > { %655 = vmatprep.subr.bf16.mxu0 %v654_v19  ;;  %v276_v25 = vld [vmem:[%s1104_s7 + $0xb8] sm:$0xff]  ;;  %v626_v28 = vpack.c.bf16 %v274_v23, %v270_v22  ;;  %v273_v31 = vld [vmem:[%s1104_s7 + $0xa0] sm:$0xff]  ;;  %v271_v32 = vld [vmem:[%s1104_s7 + $0x90] sm:$0xff]  ;;  %s828_s29 = scalar_lea.vmem %s827_s19, 512  ;;  %p829_p11 = scmp.lt.s32.totalorder %s1181_s18, %s827_s19 }
  0x63   : > { %v658_v29 = vpack.c.bf16 %v276_v25, %v272_v24  ;;  %v275_v33 = vld [vmem:[%s1104_s7 + $0xb0] sm:$0xff]  ;;  %v278_v34 = vld [vmem:[%s1104_s7 + $0xc8] sm:$0xff]  ;;  %v280_v36 = vld [vmem:[%s1104_s7 + $0xd8] sm:$0xff]  ;;  %v628_v38 = vpack.c.bf16 %v273_v31, %v269_v30  ;;  %p824_p8 = pnand %p823_p6, %p1037_p10  ;;  %p830_p0 = scmp.lt.s32.totalorder %s828_s29, %s822_s15 }
  0x64   : > { %v282_v35 = vld [vmem:[%s1104_s7 + $0xe8] sm:$0xff]  ;;  %v284_v37 = vld [vmem:[%s1104_s7 + $0xf8] sm:$0xff]  ;;  %v660_v39 = vpack.c.bf16 %v275_v33, %v271_v32  ;;  %v277_v42 = vld [vmem:[%s1104_s7 + $0xc0] sm:$0xff] }
  0x65   : > { %v630_v40 = vpack.c.bf16 %v282_v35, %v278_v34  ;;  %v662_v41 = vpack.c.bf16 %v284_v37, %v280_v36  ;;  %v281_v43 = vld [vmem:[%s1104_s7 + $0xe0] sm:$0xff]  ;;  %v279_v44 = vld [vmem:[%s1104_s7 + $0xd0] sm:$0xff]  ;;  %v246_v46 = vld [vmem:[#allocation2 + $0x8] sm:$0xff]  ;;  %p825_p12 = pneg %p824_p8  ;;  %p831_p5 = por %p830_p0, %p829_p11 }
  0x66   : > { %v283_v45 = vld [vmem:[%s1104_s7 + $0xf0] sm:$0xff]  ;;  %v286_v47 = vld [vmem:[%s1104_s7 + $0x108] sm:$0xff]  ;;  %388 = vmatprep.mubr.f32.mxu1 %v246_v46  ;;  %v248_v49 = vld [vmem:[#allocation2 + $0x18] sm:$0xff]  ;;  %v632_v52 = vpack.c.bf16 %v281_v43, %v277_v42 }
  0x67   : > { %v290_v48 = vld [vmem:[%s1104_s7 + $0x128] sm:$0xff]  ;;  %v288_v50 = vld [vmem:[%s1104_s7 + $0x118] sm:$0xff]  ;;  %463 = vmatprep.mubr.f32.mxu0 %v248_v49  ;;  %v664_v53 = vpack.c.bf16 %v283_v45, %v279_v44  ;;  %v285_v56 = vld [vmem:[%s1104_s7 + $0x100] sm:$0xff]  ;;  %p832_p9 = pnand %p831_p5, %p825_p12 }
  0x68   : > { %625 = vmatpush1.bf16.xpose.msra.mxu1 %v624_v26  ;;  %v292_v51 = vld [vmem:[%s1104_s7 + $0x138] sm:$0xff]  ;;  %v634_v54 = vpack.c.bf16 %v290_v48, %v286_v47  ;;  %v289_v57 = vld [vmem:[%s1104_s7 + $0x120] sm:$0xff]  ;;  %v287_v58 = vld [vmem:[%s1104_s7 + $0x110] sm:$0xff] }
  0x69   : > { %657 = vmatpush1.bf16.xpose.msra.mxu0 %v656_v27  ;;  %627 = vmatprep.subr.bf16.mxu1 %v626_v28  ;;  %v666_v55 = vpack.c.bf16 %v292_v51, %v288_v50  ;;  %v291_v59 = vld [vmem:[%s1104_s7 + $0x130] sm:$0xff]  ;;  %v294_v60 = vld [vmem:[%s1104_s7 + $0x148] sm:$0xff]  ;;  %v296_v62 = vld [vmem:[%s1104_s7 + $0x158] sm:$0xff]  ;;  %v636_v0 = vpack.c.bf16 %v289_v57, %v285_v56 }
  0x6a   : > { %659 = vmatprep.subr.bf16.mxu0 %v658_v29  ;;  %v298_v61 = vld [vmem:[%s1104_s7 + $0x168] sm:$0xff]  ;;  %v300_v63 = vld [vmem:[%s1104_s7 + $0x178] sm:$0xff]  ;;  %v668_v1 = vpack.c.bf16 %v291_v59, %v287_v58  ;;  %v293_v4 = vld [vmem:[%s1104_s7 + $0x140] sm:$0xff] }
  0x6b   : > { %v638_v2 = vpack.c.bf16 %v298_v61, %v294_v60  ;;  %v670_v3 = vpack.c.bf16 %v300_v63, %v296_v62  ;;  %v297_v5 = vld [vmem:[%s1104_s7 + $0x160] sm:$0xff]  ;;  %v295_v6 = vld [vmem:[%s1104_s7 + $0x150] sm:$0xff]  ;;  %v302_v8 = vld [vmem:[%s1104_s7 + $0x188] sm:$0xff] }
  0x6c   : > { %v299_v7 = vld [vmem:[%s1104_s7 + $0x170] sm:$0xff]  ;;  %v306_v9 = vld [vmem:[%s1104_s7 + $0x1a8] sm:$0xff]  ;;  %v304_v10 = vld [vmem:[%s1104_s7 + $0x198] sm:$0xff]  ;;  %v640_v12 = vpack.c.bf16 %v297_v5, %v293_v4 }
  0x6d   : > { %v308_v11 = vld [vmem:[%s1104_s7 + $0x1b8] sm:$0xff]  ;;  %v672_v13 = vpack.c.bf16 %v299_v7, %v295_v6  ;;  %v642_v14 = vpack.c.bf16 %v306_v9, %v302_v8  ;;  %v301_v16 = vld [vmem:[%s1104_s7 + $0x180] sm:$0xff]  ;;  %v303_v18 = vld [vmem:[%s1104_s7 + $0x190] sm:$0xff] }
  0x6e   : > { %v674_v15 = vpack.c.bf16 %v308_v11, %v304_v10  ;;  %v305_v17 = vld [vmem:[%s1104_s7 + $0x1a0] sm:$0xff]  ;;  %v307_v19 = vld [vmem:[%s1104_s7 + $0x1b0] sm:$0xff]  ;;  %v310_v20 = vld [vmem:[%s1104_s7 + $0x1c8] sm:$0xff] }
  0x6f   : > { %v314_v21 = vld [vmem:[%s1104_s7 + $0x1e8] sm:$0xff]  ;;  %v312_v22 = vld [vmem:[%s1104_s7 + $0x1d8] sm:$0xff]  ;;  %v644_v24 = vpack.c.bf16 %v305_v17, %v301_v16  ;;  %v676_v25 = vpack.c.bf16 %v307_v19, %v303_v18  ;;  %v309_v28 = vld [vmem:[%s1104_s7 + $0x1c0] sm:$0xff] }
  0x70   : > { %629 = vmatpush1.bf16.xpose.msra.mxu1 %v628_v38  ;;  %v316_v23 = vld [vmem:[%s1104_s7 + $0x1f8] sm:$0xff]  ;;  %v646_v26 = vpack.c.bf16 %v314_v21, %v310_v20  ;;  %v313_v29 = vld [vmem:[%s1104_s7 + $0x1e0] sm:$0xff]  ;;  %v311_v30 = vld [vmem:[%s1104_s7 + $0x1d0] sm:$0xff] }
  0x71   : > { %661 = vmatpush1.bf16.xpose.msra.mxu0 %v660_v39  ;;  %631 = vmatprep.subr.bf16.mxu1 %v630_v40  ;;  %v678_v27 = vpack.c.bf16 %v316_v23, %v312_v22  ;;  %v315_v31 = vld [vmem:[%s1104_s7 + $0x1f0] sm:$0xff]  ;;  %v648_v32 = vpack.c.bf16 %v313_v29, %v309_v28  ;;  %v245_v34 = vld [vmem:[#allocation2] sm:$0xff]  ;;  %v250_v36 = vld [vmem:[#allocation2 + $0x28] sm:$0xff] }
  0x72   : > { %663 = vmatprep.subr.bf16.mxu0 %v662_v41  ;;  %v680_v33 = vpack.c.bf16 %v315_v31, %v311_v30  ;;  %v247_v35 = vld [vmem:[#allocation2 + $0x10] sm:$0xff]  ;;  %v252_v37 = vld [vmem:[#allocation2 + $0x38] sm:$0xff]  ;;  %v249_v38 = vld [vmem:[#allocation2 + $0x20] sm:$0xff] }
  0x73   : > { %v251_v39 = vld [vmem:[#allocation2 + $0x30] sm:$0xff]  ;;  %v611_v40 = vld [vmem:[%s243_s10] ss:$0 sm:$0xff] }
  0x78   : > { %633 = vmatpush1.bf16.xpose.msra.mxu1 %v632_v52 }
  0x79   : > { %665 = vmatpush1.bf16.xpose.msra.mxu0 %v664_v53  ;;  %635 = vmatprep.subr.bf16.mxu1 %v634_v54 }
  0x7a   : > { %667 = vmatprep.subr.bf16.mxu0 %v666_v55 }
  0x80   : > { %637 = vmatpush1.bf16.xpose.msra.mxu1 %v636_v0 }
  0x81   : > { %669 = vmatpush1.bf16.xpose.msra.mxu0 %v668_v1  ;;  %639 = vmatprep.subr.bf16.mxu1 %v638_v2 }
  0x82   : > { %671 = vmatprep.subr.bf16.mxu0 %v670_v3 }
  0x88   : > { %641 = vmatpush1.bf16.xpose.msra.mxu1 %v640_v12 }
  0x89   : > { %673 = vmatpush1.bf16.xpose.msra.mxu0 %v672_v13  ;;  %643 = vmatprep.subr.bf16.mxu1 %v642_v14 }
  0x8a   : > { %675 = vmatprep.subr.bf16.mxu0 %v674_v15 }
  0x90   : > { %645 = vmatpush1.bf16.xpose.msra.mxu1 %v644_v24 }
  0x91   : > { %677 = vmatpush1.bf16.xpose.msra.mxu0 %v676_v25  ;;  %647 = vmatprep.subr.bf16.mxu1 %v646_v26 }
  0x92   : > { %679 = vmatprep.subr.bf16.mxu0 %v678_v27 }
  0x98   : > { %649 = vmatpush1.bf16.xpose.msra.mxu1 %v648_v32 }
  0x99   : > { %681 = vmatpush1.bf16.xpose.msra.mxu0 %v680_v33 }
  0x9f   : > { %389 = vmatmul.mubr.f32.vlgmr.msra.gmra.mrb[0].mxu1 %v245_v34 }
  0xa0   : > { %464 = vmatmul.mubr.f32.vlgmr.msra.gmra.mrb[0].mxu0 %v247_v35  ;;  %393 = vmatprep.mubr.f32.mxu1 %v250_v36 }
  0xa1   : > { %468 = vmatprep.mubr.f32.mxu0 %v252_v37 }
  0xa3   : > { %394 = vmatmul.mubr.f32.gmra.mrb[2].mxu1 %v249_v38 }
  0xa4   : > { %469 = vmatmul.mubr.f32.gmra.mrb[2].mxu0 %v251_v39 }
 0x172   : > { %v390_v41 = vpop.f32.mrb[0].mxu1 }
 0x173   : > { %v391_v42 = vadd.f32 %v611_v40, %v390_v41  ;;  %v392_v43 = vpop.f32.mrb[1].mxu1  ;;  %v465_v44 = vpop.f32.mrb[0].mxu0 }
 0x174   : > { %v467_v45 = vpop.f32.mrb[1].mxu0 }
 0x175   : > { %v466_v46 = vadd.f32 %v465_v44, %v391_v42 }
 0x176   : > { %v395_v47 = vpop.f32.mrb[2].mxu1 }
 0x177   : > { %474 = vst [vmem:[%s238_s9] sm:$0xff] %v466_v46  ;;  %v396_v48 = vadd.f32 %v611_v40, %v395_v47  ;;  %v397_v49 = vpop.f32.mrb[3].mxu1  ;;  %v470_v50 = vpop.f32.mrb[2].mxu0 }
 0x178   : > { %v472_v51 = vpop.f32.mrb[3].mxu0 }
 0x179   : > { %v471_v52 = vadd.f32 %v470_v50, %v396_v48 }
 0x17b   : > { %475 = vst [vmem:[%s238_s9 + $0x8] sm:$0xff] %v471_v52 }
 0x17c   : > { %835 = shalt.err (!%p832_p9)
}
 0x17d   : > { %s836_s7 = scalar_lea.hbm %s1186_s21, 256  ;;  %s840_s24 = scalar_lea.hbm %s1238_s3, 512 }
 0x17e   : > { %p837_p1 = scmp.ne.s32.totalorder %s1186_s21, %s836_s7  ;;  %p841_p7 = scmp.lt.u32.totalorder %s1186_s21, %s1238_s3 }
 0x17f   : > { %p842_p13 = scmp.lt.u32.totalorder %s840_s24, %s836_s7  ;;  %p844_p6 = scmp.lt.u32.totalorder %s836_s7, %s1186_s21 }
 0x180   : > { %p838_p2 = pnand %p837_p1, %p1037_p10 }
 0x181   : > { %p843_p4 = por %p842_p13, %p841_p7 }
 0x182   : > { %p839_p3 = pneg %p838_p2 }
 0x183   : > { %p845_p8 = por %p844_p6, %p843_p4 }
 0x185   : > { %p846_p12 = pnand %p845_p8, %p839_p3 }
 0x187   : > { %849 = shalt.err (!%p846_p12)
}
 0x188   : > { %s915_s9 = smov 128   ;;  %s916_s25 = smov 256  }
 0x189   : > { %s917_s8 = smov 8  }
 0x18a   : > { %692 = dma.vmem_to_hbm [thread:$0]  (%p1037_p10), %s1181_s18, 256, %s1186_s21, %s477_s4, %s915_s9, %s916_s25, %s917_s8  }
 0x18b PF: > { %s507_s26 = sand.u32 1, %s888_s12   ;;  %p1256_p11 = scmp.ne.s32.totalorder %s1246_s23, 0 }
 0x18c   : > { %p1257_p0 = scmp.ge.s32.totalorder %s908_s17, 2  ;;  %s508_s15 = scalar_lea.sflag [#allocation4], %s507_s26 }
 0x18e   : > { %p703_p5 = pnand %p1257_p0, %p1256_p11 }
 0x190   : > { %883 = dma.done.wait (!%p703_p5), %s508_s15, 256  }
 0x191   : > { %885 = vsyncadd (!%p703_p5), %s508_s15, 4294967040  ;;  %s20_s17 = sadd.s32 1, %s908_s17   ;;  %s1258_s12 = smov %s892_s13 }
 0x192   : > { %p17_p9 = scmp.ge.s32.totalorder %s20_s17, 4   ;;  %s1259_s13 = smov %s896_s14 }
 0x193   : > { %s1260_s14 = smov %s1046_s5  ;;  %s1261_s15 = smov %s904_s16 }
 0x194   : > { %s1262_s16 = smov %s1264_s28  ;;  %19 = sbr.rel (!%p17_p9) target bundleno = 7 (0x7), region = 86 }
 0x19b   :  { %513 = vsyncpa [#allocation3], 1 }
 0x19c   :  { %515 = vsyncpa [#allocation3 + $0x1], 1 }
 0x19d   :  { %516 = vsyncpa [#allocation6], 1 }
 0x19e   :  { %518 = vsyncpa [#allocation6 + $0x1], 1 }
 0x19f   :  { %519 = vsyncpa [#allocation4], 1 }
 0x1a0   :  { %521 = vsyncpa [#allocation4 + $0x1], 1 }

</bundles_post_ra>
